<compile_context>
chip_gen: v7x
topology: tpu7x:2x2x1
jax: 0.10.0
libtpu: 0.0.40
codegen_flags: <defaults>
</compile_context>

<pallas_src>
import functools

import jax
import jax.numpy as jnp
from jax.experimental import pallas as pl
from jax.experimental.pallas import tpu as pltpu


def _dma_flatten_kernel(x_ref, o_ref, sem, *, chunk_bounds):
    # x_ref / o_ref are raw HBM refs (memory_space=pl.ANY) of shape (n, flat).
    # The flatten already happened (metadata-only reshape in the wrapper), so
    # the kernel is a straight HBM->HBM copy done by the DMA engines,
    # bypassing the TensorCore completely. Start every chunk, then wait.
    copies = []
    for c, (r0, rows) in enumerate(chunk_bounds):
        cp = pltpu.make_async_copy(
            x_ref.at[pl.ds(r0, rows), :],
            o_ref.at[pl.ds(r0, rows), :],
            sem.at[c],
        )
        cp.start()
        copies.append(cp)
    for cp in copies:
        cp.wait()


def flatten_layer(x: jax.Array) -> jax.Array:
    """Pallas equivalent of FlattenLayer.forward: x.view(x.shape[0], -1)."""
    n = x.shape[0]
    flat = 1
    for d in x.shape[1:]:
        flat *= d

    # Metadata-only reshape in the wrapper: the kernel sees a 2-D (n, flat)
    # operand already in the exact output layout, so the kernel body is a
    # pure copy.
    # TODO(synk): a bare x.reshape(n, flat) is free in XLA; the mandated
    # Pallas kernel still costs one HBM read + one HBM write that a pure
    # view/reshape would not (aliasing it away would require the caller to
    # donate x).
    x2 = x.reshape(n, flat)

    itemsize = jnp.dtype(x.dtype).itemsize
    total_bytes = n * flat * itemsize

    # Chunking along rows (contiguous slices of a contiguous array):
    #   * at most 4 large DMAs so several transfers are in flight,
    #   * never smaller than ~1 MiB per chunk (tiny inputs -> single DMA),
    #   * ragged row counts are fine: DMA has no (8,128) tiling constraint.
    min_chunk_bytes = 1 * 1024 * 1024
    num_chunks = max(1, min(4, n, total_bytes // min_chunk_bytes))
    base, rem = divmod(n, num_chunks)
    chunk_bounds = []
    r0 = 0
    for c in range(num_chunks):
        rows = base + (1 if c < rem else 0)
        if rows > 0:
            chunk_bounds.append((r0, rows))
            r0 += rows
    chunk_bounds = tuple(chunk_bounds)

    kernel = functools.partial(_dma_flatten_kernel, chunk_bounds=chunk_bounds)

    return pl.pallas_call(
        kernel,
        out_shape=jax.ShapeDtypeStruct((n, flat), x.dtype),
        in_specs=[pl.BlockSpec(memory_space=pl.ANY)],
        out_specs=pl.BlockSpec(memory_space=pl.ANY),
        scratch_shapes=[pltpu.SemaphoreType.DMA((len(chunk_bounds),))],
        cost_estimate=pl.CostEstimate(
            flops=0,
            transcendentals=0,
            bytes_accessed=2 * total_bytes,
        ),
    )(x2)


if __name__ == "__main__":
    key = jax.random.PRNGKey(0)

    # Primary test: NCHW input, batch=2, channels=4, spatial=16x16.
    x = jax.random.normal(key, (2, 4, 16, 16), dtype=jnp.float32)
    y = flatten_layer(x)
    jax.block_until_ready(y)

    y_ref = x.reshape(x.shape[0], -1)
    assert y.shape == (2, 4 * 16 * 16), y.shape
    assert y.dtype == x.dtype
    assert jnp.array_equal(y, y_ref), "Pallas flatten mismatch vs reference"

    # Secondary test: awkward, non-(8,128)-aligned shape — exercises the
    # fact that the DMA path has no tiling constraints or fallback cliffs.
    x2 = jax.random.normal(key, (3, 5, 7), dtype=jnp.float32)
    y2 = flatten_layer(x2)
    jax.block_until_ready(y2)
    assert jnp.array_equal(y2, x2.reshape(3, -1)), "Pallas flatten mismatch (ragged)"

    print("KERNEL_OK")
</pallas_src>

<mosaic_0001>
module attributes {stable_mosaic.version = 11 : i64} {
  func.func @_dma_flatten_kernel(%arg0: memref<2x1024xf32, #tpu.memory_space<any>>, %arg1: memref<2x1024xf32, #tpu.memory_space<any>>, %arg2: memref<1x!tpu.dma_semaphore, #tpu.memory_space<semaphore_mem>>) attributes {dimension_semantics = [], scalar_prefetch = 0 : i64, scratch_operands = 1 : i64, tpu.core_type = #tpu.core_type<tc>} {
    %c0_i32 = arith.constant 0 : i32
    %c0_i32_0 = arith.constant 0 : i32
    %c0_i32_1 = arith.constant 0 : i32
    %0 = tpu.memref_slice %arg0[%c0_i32_0, %c0_i32_1] : memref<2x1024xf32, #tpu.memory_space<any>> -> memref<2x1024xf32, #tpu.memory_space<any>>
    %c0_i32_2 = arith.constant 0 : i32
    %c0_i32_3 = arith.constant 0 : i32
    %1 = tpu.memref_slice %arg1[%c0_i32_2, %c0_i32_3] : memref<2x1024xf32, #tpu.memory_space<any>> -> memref<2x1024xf32, #tpu.memory_space<any>>
    %2 = tpu.memref_slice %arg2[%c0_i32] : memref<1x!tpu.dma_semaphore, #tpu.memory_space<semaphore_mem>> -> memref<1x!tpu.dma_semaphore, #tpu.memory_space<semaphore_mem>>
    %3 = tpu.memref_squeeze %2 : memref<1x!tpu.dma_semaphore, #tpu.memory_space<semaphore_mem>> -> memref<!tpu.dma_semaphore, #tpu.memory_space<semaphore_mem>>
    tpu.enqueue_dma source(%0 : memref<2x1024xf32, #tpu.memory_space<any>>) target(%1 : memref<2x1024xf32, #tpu.memory_space<any>>) target_semaphore(%3 : memref<!tpu.dma_semaphore, #tpu.memory_space<semaphore_mem>>)
    %c0_i32_4 = arith.constant 0 : i32
    %c0_i32_5 = arith.constant 0 : i32
    %c0_i32_6 = arith.constant 0 : i32
    %4 = tpu.memref_slice %arg0[%c0_i32_5, %c0_i32_6] : memref<2x1024xf32, #tpu.memory_space<any>> -> memref<2x1024xf32, #tpu.memory_space<any>>
    %c0_i32_7 = arith.constant 0 : i32
    %c0_i32_8 = arith.constant 0 : i32
    %5 = tpu.memref_slice %arg1[%c0_i32_7, %c0_i32_8] : memref<2x1024xf32, #tpu.memory_space<any>> -> memref<2x1024xf32, #tpu.memory_space<any>>
    %6 = tpu.memref_slice %arg2[%c0_i32_4] : memref<1x!tpu.dma_semaphore, #tpu.memory_space<semaphore_mem>> -> memref<1x!tpu.dma_semaphore, #tpu.memory_space<semaphore_mem>>
    %7 = tpu.memref_squeeze %6 : memref<1x!tpu.dma_semaphore, #tpu.memory_space<semaphore_mem>> -> memref<!tpu.dma_semaphore, #tpu.memory_space<semaphore_mem>>
    tpu.wait_dma2 semaphore(%7 : memref<!tpu.dma_semaphore, #tpu.memory_space<semaphore_mem>>) src(%4 : memref<2x1024xf32, #tpu.memory_space<any>>) dst(%5 : memref<2x1024xf32, #tpu.memory_space<any>>)
    return
  }
}

</mosaic_0001>

<bundles_post_ra>
// kernel: tpu_custom_call.1
= control target key start
LH: loop header
LB: loop body
LE: loop exit
PB: predicated region body
PF: predicated region fallthrough
CT: control target
= control target key end

     0   :  { %s35_s6 = smov [#allocation2]   ;;  %s36_s7 = smov [#allocation3]   ;;  %s54_s0 = inlined_call_operand.hbm [shape: f32[2,1024], index: 0, kind: input, shape index: {}]   ;;  %s55_s1 = inlined_call_operand.hbm [shape: f32[2,1024], index: 1, kind: output, shape index: {}]  }
   0x1   :  { %s37_s8 = smov 0  }
   0x2   :  { %18 = dma.general %s54_s0, 256, %s55_s1, %s35_s6, %s36_s7, [#allocation4], %s37_s8, 0  }
   0x3   :  { %33 = dma.done.wait [#allocation2], 256 }
   0x4   :  { %34 = vsyncadd [#allocation2], 4294967040 }
   0x5   :  { %23 = vsyncmov [#allocation2] }
   0x8   :  { %s24_s13 = vpop.sfrf %23 }
   0x9   :  { %p29_p0 = scmp.ne.s32.totalorder %s24_s13, 0 }
   0xb   :  { %28 = shalt.err (%p29_p0)  }

</bundles_post_ra>
